<compile_context>
chip_gen: v7x
topology: tpu7x:2x2x1
jax: 0.10.0
libtpu: 0.0.40
codegen_flags: <defaults>
</compile_context>

<pallas_src>
import jax
import jax.numpy as jnp
from jax.experimental import pallas as pl
from jax.experimental.pallas import tpu as pltpu

HIDDEN = 500       # matches nn.Linear(inp, 500)
HIDDEN_PAD = 512   # zero-padded hidden width (multiple of 128)
LANE = 128


def _round_up(x, m):
    return (x + m - 1) // m * m


def _dims(inp, outsize):
    """Static output geometry shared by pack_params / kernel / forward."""
    if inp < outsize:
        eff = min(6 * inp, outsize)   # cat([x, z*5])[:, :outsize] width
    else:
        eff = outsize                 # x[:, :outsize]
    inp_pad = _round_up(inp, LANE)
    out_pad = _round_up(eff, LANE)
    w2_lanes = min(inp_pad, out_pad)  # lanes of real (non-zero) layer-2 output
    return eff, out_pad, w2_lanes


# ---------------------------------------------------------------------------
# Parameter packing (done once, outside the hot path).
# Raw per-branch f32 params (weights transposed vs PyTorch: (in, out)) ->
# fused, padded, bf16 kernel layout + a single packed f32 bias buffer.
# ---------------------------------------------------------------------------
def pack_params(params, inp, outsize):
    eff, out_pad, w2_lanes = _dims(inp, outsize)

    def pad_cols(w, n):
        c = w.shape[1]
        if c >= n:
            return w[:, :n]
        return jnp.pad(w, ((0, 0), (0, n - c)))

    def pad_rows(w, n):
        return jnp.pad(w, ((0, n - w.shape[0]), (0, 0)))

    # Layer 1 fused across branches: (inp, 2*HIDDEN_PAD), bf16.
    w1 = jnp.concatenate(
        [pad_cols(params["w1w"], HIDDEN_PAD), pad_cols(params["w1s"], HIDDEN_PAD)],
        axis=1).astype(jnp.bfloat16)
    # Layer 2 stacked per branch, lanes padded/truncated to w2_lanes: bf16.
    w2 = jnp.stack(
        [pad_cols(pad_rows(params["w2w"], HIDDEN_PAD), w2_lanes),
         pad_cols(pad_rows(params["w2s"], HIDDEN_PAD), w2_lanes)],
        axis=0).astype(jnp.bfloat16)                      # (2, HIDDEN_PAD, w2_lanes)
    # Single packed bias buffer (one DMA): row 0 = fused b1, row 1 = fused b2.
    b1 = jnp.concatenate(
        [pad_cols(params["b1w"], HIDDEN_PAD), pad_cols(params["b1s"], HIDDEN_PAD)],
        axis=1)                                           # (1, 2*HIDDEN_PAD) f32
    b2 = jnp.concatenate(
        [pad_cols(params["b2w"], w2_lanes), pad_cols(params["b2s"], w2_lanes)],
        axis=1)                                           # (1, 2*w2_lanes) f32
    width = max(2 * HIDDEN_PAD, 2 * w2_lanes)
    bias = jnp.concatenate([pad_cols(b1, width), pad_cols(b2, width)], axis=0)
    return {"w1": w1, "w2": w2, "bias": bias}


# ---------------------------------------------------------------------------
# Pallas kernel: both 2-layer MLPs in one call, lane-dense padded output.
# ---------------------------------------------------------------------------
def addnoiser_mlps(nz, packed, inp, outsize):
    """nz: (B, inp) f32. Returns (B, 2*out_pad) f32:
       lanes [0, out_pad)           -> independent_where (zero-padded past inp),
       lanes [out_pad, 2*out_pad)   -> independent_size  (zero-padded past inp)."""
    _, out_pad, w2_lanes = _dims(inp, outsize)
    B = nz.shape[0]
    zero_lanes = out_pad - w2_lanes

    def kernel(nz_ref, w1_ref, w2_ref, bias_ref, out_ref):
        # Fused layer 1 for both branches: (B, inp) @ (inp, 2*HIDDEN_PAD).
        nz16 = nz_ref[...].astype(jnp.bfloat16)
        h = jnp.dot(nz16, w1_ref[...], preferred_element_type=jnp.float32)
        # bias add + ReLU in f32 (v5e-friendly), cast to bf16 only for the MXU.
        h = jnp.maximum(h + bias_ref[0:1, :2 * HIDDEN_PAD], 0.0).astype(jnp.bfloat16)
        h_w = h[:, :HIDDEN_PAD]
        h_s = h[:, HIDDEN_PAD:]

        # Per-branch layer 2 (f32 accumulation on the MXU).
        o_w = (jnp.dot(h_w, w2_ref[0], preferred_element_type=jnp.float32)
               + bias_ref[1:2, :w2_lanes])
        o_s = (jnp.dot(h_s, w2_ref[1], preferred_element_type=jnp.float32)
               + bias_ref[1:2, w2_lanes:2 * w2_lanes])

        # Single dense, unmasked, lane-aligned store of the whole output block.
        if zero_lanes:
            z = jnp.zeros((B, zero_lanes), jnp.float32)
            out_ref[...] = jnp.concatenate([o_w, z, o_s, z], axis=1)
        else:
            out_ref[...] = jnp.concatenate([o_w, o_s], axis=1)

    vmem = pl.BlockSpec(memory_space=pltpu.VMEM)
    return pl.pallas_call(
        kernel,
        out_shape=jax.ShapeDtypeStruct((B, 2 * out_pad), jnp.float32),
        in_specs=[vmem] * 4,
        out_specs=vmem,
    )(nz, packed["w1"], packed["w2"], packed["bias"])


def addnoiser_forward(nz, packed, inp, outsize=200):
    """Mirrors ADDNOISER.forward semantics (including the 6*inp < outsize edge
    case, where the PyTorch cat+slice yields only 6*inp columns). Supports
    batched nz (B, inp); the module itself uses B=1. Callers on a
    latency-critical path can consume the raw (B, 2*out_pad) block from
    addnoiser_mlps directly and skip the slicing below."""
    eff, out_pad, _ = _dims(inp, outsize)
    out = addnoiser_mlps(nz, packed, inp, outsize)       # (B, 2*out_pad)
    ind_where = out[:, :eff]
    ind_size = out[:, out_pad:out_pad + eff]
    return ind_where.reshape(-1), ind_size.reshape(-1)


# ---------------------------------------------------------------------------
# Deterministic init (weights ~ N(0, 0.01), biases = 0), transposed vs PyTorch.
# ---------------------------------------------------------------------------
def init_params(key, inp):
    k1, k2, k3, k4 = jax.random.split(key, 4)
    std = 0.01
    return {
        "w1w": jax.random.normal(k1, (inp, HIDDEN), jnp.float32) * std,
        "b1w": jnp.zeros((1, HIDDEN), jnp.float32),
        "w2w": jax.random.normal(k2, (HIDDEN, inp), jnp.float32) * std,
        "b2w": jnp.zeros((1, inp), jnp.float32),
        "w1s": jax.random.normal(k3, (inp, HIDDEN), jnp.float32) * std,
        "b1s": jnp.zeros((1, HIDDEN), jnp.float32),
        "w2s": jax.random.normal(k4, (HIDDEN, inp), jnp.float32) * std,
        "b2s": jnp.zeros((1, inp), jnp.float32),
    }


if __name__ == "__main__":
    inp = 64          # small "inp" consistent with the module
    outsize = 200     # default forward() argument

    key = jax.random.PRNGKey(0)
    key_nz, key_params, key_batch = jax.random.split(key, 3)

    # self.nz = self.z.uniform_(-0, 0.5)  -> uniform in [0, 0.5)
    nz = jax.random.uniform(key_nz, (1, inp), jnp.float32, minval=0.0, maxval=0.5)
    params = init_params(key_params, inp)
    packed = pack_params(params, inp, outsize)

    fwd = jax.jit(addnoiser_forward, static_argnums=(2, 3))
    ind_where, ind_size = fwd(nz, packed, inp, outsize)
    jax.block_until_ready((ind_where, ind_size))

    assert ind_where.shape == (outsize,)
    assert ind_size.shape == (outsize,)

    # --- Reference 1: same bf16-weight math in plain JAX (tight tolerance) ---
    def ref_mlp_bf16(x, w1, b1, w2, b2):
        h = jnp.dot(x.astype(jnp.bfloat16), w1.astype(jnp.bfloat16),
                    preferred_element_type=jnp.float32) + b1
        h = jnp.maximum(h, 0.0).astype(jnp.bfloat16)
        return jnp.dot(h, w2.astype(jnp.bfloat16),
                       preferred_element_type=jnp.float32) + b2

    def pad_slice(x):
        if inp < outsize:
            z = jnp.zeros_like(x)
            x = jnp.concatenate([x, z, z, z, z, z], axis=1)
        return x[:, :outsize].reshape(-1)

    ref_w16 = pad_slice(ref_mlp_bf16(nz, params["w1w"], params["b1w"],
                                     params["w2w"], params["b2w"]))
    ref_s16 = pad_slice(ref_mlp_bf16(nz, params["w1s"], params["b1s"],
                                     params["w2s"], params["b2s"]))
    assert jnp.allclose(ind_where, ref_w16, atol=1e-4, rtol=1e-4)
    assert jnp.allclose(ind_size, ref_s16, atol=1e-4, rtol=1e-4)

    # --- Reference 2: full-f32 math (loose tolerance, bf16 weights) ---
    def ref_mlp_f32(x, w1, b1, w2, b2):
        return jnp.maximum(x @ w1 + b1, 0.0) @ w2 + b2

    ref_w32 = pad_slice(ref_mlp_f32(nz, params["w1w"], params["b1w"],
                                    params["w2w"], params["b2w"]))
    ref_s32 = pad_slice(ref_mlp_f32(nz, params["w1s"], params["b1s"],
                                    params["w2s"], params["b2s"]))
    assert jnp.allclose(ind_where, ref_w32, atol=1e-3)
    assert jnp.allclose(ind_size, ref_s32, atol=1e-3)

    # --- Batched path (perf-review lever): same weights, B=8 rows of nz ------
    B = 8
    nz_b = jax.random.uniform(key_batch, (B, inp), jnp.float32, 0.0, 0.5)
    bw, bs = fwd(nz_b, packed, inp, outsize)
    jax.block_until_ready((bw, bs))
    assert bw.shape == (B * outsize,) and bs.shape == (B * outsize,)
    ref_bw = pad_slice(ref_mlp_bf16(nz_b, params["w1w"], params["b1w"],
                                    params["w2w"], params["b2w"]))
    ref_bs = pad_slice(ref_mlp_bf16(nz_b, params["w1s"], params["b1s"],
                                    params["w2s"], params["b2s"]))
    assert jnp.allclose(bw, ref_bw, atol=1e-4, rtol=1e-4)
    assert jnp.allclose(bs, ref_bs, atol=1e-4, rtol=1e-4)

    print("KERNEL_OK")
</pallas_src>

<mosaic_0001>
module attributes {stable_mosaic.version = 11 : i64} {
  func.func @kernel(%arg0: memref<1x64xf32, #tpu.memory_space<vmem>>, %arg1: memref<64x1024xbf16, #tpu.memory_space<vmem>>, %arg2: memref<2x512x128xbf16, #tpu.memory_space<vmem>>, %arg3: memref<2x1024xf32, #tpu.memory_space<vmem>>, %arg4: memref<1x512xf32, #tpu.memory_space<vmem>>) attributes {dimension_semantics = [], scalar_prefetch = 0 : i64, scratch_operands = 0 : i64, tpu.core_type = #tpu.core_type<tc>} {
    %c0 = arith.constant 0 : index
    %c0_0 = arith.constant 0 : index
    %0 = vector.load %arg0[%c0, %c0_0] : memref<1x64xf32, #tpu.memory_space<vmem>>, vector<1x64xf32>
    %1 = arith.truncf %0 : vector<1x64xf32> to vector<1x64xbf16>
    %c0_1 = arith.constant 0 : index
    %c0_2 = arith.constant 0 : index
    %2 = vector.load %arg1[%c0_1, %c0_2] : memref<64x1024xbf16, #tpu.memory_space<vmem>>, vector<64x1024xbf16>
    %cst = arith.constant dense<0.000000e+00> : vector<1x1024xf32>
    %3 = tpu.matmul %1, %2, %cst {dimension_numbers = #tpu.dot_dimension_numbers<[1], [0], [0], [1], [0, 0, 1, 1], [], []>} : vector<1x64xbf16>, vector<64x1024xbf16>, vector<1x1024xf32> -> vector<1x1024xf32>
    %c0_3 = arith.constant 0 : index
    %c0_4 = arith.constant 0 : index
    %4 = vector.load %arg3[%c0_3, %c0_4] : memref<2x1024xf32, #tpu.memory_space<vmem>>, vector<1x1024xf32>
    %5 = arith.addf %3, %4 : vector<1x1024xf32>
    %cst_5 = arith.constant 0.000000e+00 : f32
    %6 = vector.broadcast %cst_5 : f32 to vector<1x1024xf32>
    %7 = arith.maximumf %5, %6 : vector<1x1024xf32>
    %8 = arith.truncf %7 : vector<1x1024xf32> to vector<1x1024xbf16>
    %9 = vector.extract_strided_slice %8 {offsets = [0, 0], sizes = [1, 512], strides = [1, 1]} : vector<1x1024xbf16> to vector<1x512xbf16>
    %10 = vector.extract_strided_slice %8 {offsets = [0, 512], sizes = [1, 512], strides = [1, 1]} : vector<1x1024xbf16> to vector<1x512xbf16>
    %c0_6 = arith.constant 0 : index
    %c0_7 = arith.constant 0 : index
    %c0_8 = arith.constant 0 : index
    %11 = vector.load %arg2[%c0_6, %c0_7, %c0_8] : memref<2x512x128xbf16, #tpu.memory_space<vmem>>, vector<1x512x128xbf16>
    %12 = vector.shape_cast %11 : vector<1x512x128xbf16> to vector<512x128xbf16>
    %cst_9 = arith.constant dense<0.000000e+00> : vector<1x128xf32>
    %13 = tpu.matmul %9, %12, %cst_9 {dimension_numbers = #tpu.dot_dimension_numbers<[1], [0], [0], [1], [0, 0, 1, 1], [], []>} : vector<1x512xbf16>, vector<512x128xbf16>, vector<1x128xf32> -> vector<1x128xf32>
    %c1 = arith.constant 1 : index
    %c0_10 = arith.constant 0 : index
    %14 = vector.load %arg3[%c1, %c0_10] : memref<2x1024xf32, #tpu.memory_space<vmem>>, vector<1x128xf32>
    %15 = arith.addf %13, %14 : vector<1x128xf32>
    %c1_11 = arith.constant 1 : index
    %c0_12 = arith.constant 0 : index
    %c0_13 = arith.constant 0 : index
    %16 = vector.load %arg2[%c1_11, %c0_12, %c0_13] : memref<2x512x128xbf16, #tpu.memory_space<vmem>>, vector<1x512x128xbf16>
    %17 = vector.shape_cast %16 : vector<1x512x128xbf16> to vector<512x128xbf16>
    %cst_14 = arith.constant dense<0.000000e+00> : vector<1x128xf32>
    %18 = tpu.matmul %10, %17, %cst_14 {dimension_numbers = #tpu.dot_dimension_numbers<[1], [0], [0], [1], [0, 0, 1, 1], [], []>} : vector<1x512xbf16>, vector<512x128xbf16>, vector<1x128xf32> -> vector<1x128xf32>
    %c1_15 = arith.constant 1 : index
    %c128 = arith.constant 128 : index
    %19 = vector.load %arg3[%c1_15, %c128] : memref<2x1024xf32, #tpu.memory_space<vmem>>, vector<1x128xf32>
    %20 = arith.addf %18, %19 : vector<1x128xf32>
    %cst_16 = arith.constant 0.000000e+00 : f32
    %21 = vector.broadcast %cst_16 : f32 to vector<1x128xf32>
    %22 = tpu.concatenate %15, %21, %20, %21 in 1 : vector<1x128xf32>, vector<1x128xf32>, vector<1x128xf32>, vector<1x128xf32> -> vector<1x512xf32>
    %c0_17 = arith.constant 0 : index
    %c0_18 = arith.constant 0 : index
    %23 = vector.load %arg4[%c0_17, %c0_18] : memref<1x512xf32, #tpu.memory_space<vmem>>, vector<1x512xf32>
    tpu.vector_store %arg4[%c0_17, %c0_18], %22 {strides = array<i32>} : memref<1x512xf32, #tpu.memory_space<vmem>>, vector<1x512xf32>,
    return
  }
}

</mosaic_0001>

<bundles_post_ra>
// kernel: addnoiser_forward.1
= control target key start
LH: loop header
LB: loop body
LE: loop exit
PB: predicated region body
PF: predicated region fallthrough
CT: control target
= control target key end

     0   :  { %9 = vsyncpa [#allocation3], 0  ;;  %s1679_s0 = inlined_call_operand.hbm [shape: f32[1,64], index: 0, kind: input, shape index: {}]   ;;  %s1680_s1 = inlined_call_operand.hbm [shape: bf16[64,1024], index: 1, kind: input, shape index: {}]   ;;  %s1681_s2 = inlined_call_operand.hbm [shape: bf16[2,512,128], index: 2, kind: input, shape index: {}]   ;;  %s1682_s3 = inlined_call_operand.hbm [shape: f32[2,1024], index: 3, kind: input, shape index: {}]   ;;  %s1683_s4 = inlined_call_operand.vmem [shape: f32[1,512], index: 4, kind: output, shape index: {}]  }
   0x1   :  { %10 = vsyncpa [#allocation5], 0 }
   0x2   :  { %11 = vsyncpa [#allocation8], 0  ;;  %s1561_s15 = smov [#allocation4]   ;;  %s1467_s19 = scalar_lea.hbm %s1680_s1, 4096 }
   0x3   :  { %s27_s16 = sshll.u32 %s1561_s15, 4  ;;  %p1468_p0 = scmp.ne.s32.totalorder %s1680_s1, %s1467_s19  ;;  %s28_s16 = int_to_ptr.vmem [resolvable:$true] %s27_s16 }
   0x4   :  { %p1471_p1 = scmp.lt.u32.totalorder %s1467_s19, %s1680_s1 }
   0x6   :  { %p1473_p2 = pnand %p1471_p1, %p1468_p0 }
   0x8   :  { %1476 = shalt.err (!%p1473_p2)
}
   0x9   :  { %s1477_s24 = scalar_lea.vmem %s28_s16, 4096  ;;  %p1482_p4 = scmp.lt.s32.totalorder %s28_s16, %s28_s16 }
   0xa   :  { %p1478_p3 = scmp.ne.s32.totalorder %s28_s16, %s1477_s24  ;;  %p1483_p5 = scmp.lt.s32.totalorder %s1477_s24, %s1477_s24 }
   0xc   :  { %p1484_p6 = por %p1483_p5, %p1482_p4 }
   0xe   :  { %p1485_p7 = pnand %p1484_p6, %p1478_p3 }
  0x10   :  { %1488 = shalt.err (!%p1485_p7)
}
  0x11   :  { %s1562_s25 = smov 512   ;;  %s1563_s26 = smov 32  }
  0x12   :  { %33 = dma.hbm_to_vmem [thread:$0]  %s1680_s1, 4096, %s28_s16, [#allocation5], %s1562_s25, %s1562_s25, %s1563_s26  }
  0x13   :  { %s1564_s29 = smov [#allocation2]   ;;  %s1565_s5 = smov [#allocation6]  }
  0x14   :  { %s18_s30 = sshll.u32 %s1564_s29, 4  ;;  %s39_s6 = sshll.u32 %s1565_s5, 4  ;;  %s19_s30 = int_to_ptr.vmem [resolvable:$true] %s18_s30  ;;  %s40_s6 = int_to_ptr.vmem [resolvable:$true] %s39_s6 }
  0x15   :  { %s1489_s9 = scalar_lea.hbm %s1679_s0, 16 }
  0x16   :  { %p1490_p8 = scmp.ne.s32.totalorder %s1679_s0, %s1489_s9  ;;  %p1493_p9 = scmp.lt.u32.totalorder %s1489_s9, %s1679_s0 }
  0x18   :  { %p1495_p10 = pnand %p1493_p9, %p1490_p8 }
  0x1a   :  { %1498 = shalt.err (!%p1495_p10)
}
  0x1b   :  { %s1499_s1 = scalar_lea.vmem %s19_s30, 16  ;;  %s1503_s14 = scalar_lea.vmem %s19_s30, 32 }
  0x1c   :  { %p1500_p11 = scmp.ne.s32.totalorder %s19_s30, %s1499_s1  ;;  %p1504_p12 = scmp.lt.s32.totalorder %s19_s30, %s19_s30 }
  0x1d   :  { %p1505_p13 = scmp.lt.s32.totalorder %s1503_s14, %s1499_s1 }
  0x1f   :  { %p1506_p0 = por %p1505_p13, %p1504_p12 }
  0x21   :  { %p1507_p1 = pnand %p1506_p0, %p1500_p11 }
  0x23   :  { %1510 = shalt.err (!%p1507_p1)
}
  0x24   :  { %21 = dma.hbm_to_vmem [thread:$0]  %s1679_s0, 16, %s19_s30, [#allocation3]  }
  0x25   :  { %s1511_s19 = scalar_lea.hbm %s1681_s2, 8192 }
  0x26   :  { %p1512_p2 = scmp.ne.s32.totalorder %s1681_s2, %s1511_s19  ;;  %p1515_p3 = scmp.lt.u32.totalorder %s1511_s19, %s1681_s2 }
  0x28   :  { %p1517_p4 = pnand %p1515_p3, %p1512_p2 }
  0x2a   :  { %1520 = shalt.err (!%p1517_p4)
}
  0x2b   :  { %s1521_s24 = scalar_lea.vmem %s40_s6, 8192  ;;  %p1526_p6 = scmp.lt.s32.totalorder %s40_s6, %s40_s6 }
  0x2c   :  { %p1522_p5 = scmp.ne.s32.totalorder %s40_s6, %s1521_s24  ;;  %p1527_p7 = scmp.lt.s32.totalorder %s1521_s24, %s1521_s24 }
  0x2e   :  { %p1528_p8 = por %p1527_p7, %p1526_p6 }
  0x30   :  { %p1529_p9 = pnand %p1528_p8, %p1522_p5 }
  0x32   :  { %1532 = shalt.err (!%p1529_p9)
}
  0x33   :  { %s1566_s0 = smov 64   ;;  %s1567_s25 = smov 4  }
  0x34   :  { %45 = dma.hbm_to_vmem [thread:$0]  %s1681_s2, 8192, %s40_s6, [#allocation5], %s1566_s0, %s1566_s0, %s1567_s25  }
  0x35   :  { %s1568_s28 = smov [#allocation7]   ;;  %s1533_s7 = scalar_lea.hbm %s1682_s3, 256 }
  0x36   :  { %s52_s29 = sshll.u32 %s1568_s28, 4  ;;  %p1534_p10 = scmp.ne.s32.totalorder %s1682_s3, %s1533_s7  ;;  %s53_s29 = int_to_ptr.vmem [resolvable:$true] %s52_s29 }
  0x37   :  { %p1537_p11 = scmp.lt.u32.totalorder %s1533_s7, %s1682_s3 }
  0x39   :  { %p1539_p12 = pnand %p1537_p11, %p1534_p10 }
  0x3b   :  { %1542 = shalt.err (!%p1539_p12)
}
  0x3c   :  { %s1543_s12 = scalar_lea.vmem %s53_s29, 256  ;;  %p1548_p0 = scmp.lt.s32.totalorder %s53_s29, %s53_s29 }
  0x3d   :  { %p1544_p13 = scmp.ne.s32.totalorder %s53_s29, %s1543_s12  ;;  %p1549_p1 = scmp.lt.s32.totalorder %s1543_s12, %s1543_s12 }
  0x3f   :  { %p1550_p2 = por %p1549_p1, %p1548_p0 }
  0x41   :  { %p1551_p3 = pnand %p1550_p2, %p1544_p13 }
  0x43   :  { %1554 = shalt.err (!%p1551_p3)
}
  0x44   :  { %55 = dma.hbm_to_vmem [thread:$0]  %s1682_s3, 256, %s53_s29, [#allocation8]  }
  0x45   :  { %1555 = dma.done.wait [#allocation3], 16  }
  0x46   :  { %1556 = vsyncadd [#allocation3], 4294967280 }
  0x47   :  { %1557 = dma.done.wait [#allocation5], 12288  }
  0x48   :  { %1558 = vsyncadd [#allocation5], 4294955008 }
  0x49   :  { %1559 = dma.done.wait [#allocation8], 256  }
  0x4a   :  { %1560 = vsyncadd [#allocation8], 4294967040  ;;  %v1569_v0 = vmov 0   ;;  %v71_v1 = vld [vmem:[#allocation4] sm:$0xff]  ;;  %v72_v3 = vld [vmem:[#allocation4 + $0x8] sm:$0xff]  ;;  %vm305_vm0 = vcmask 523264  }
  0x4b   :  { %341 = vmatprep.mubr.bf16.mxu0 %v1569_v0  ;;  %382 = vmatprep.mubr.bf16.mxu1 %v1569_v0  ;;  %v75_v2 = vld [vmem:[#allocation4 + $0x20] sm:$0xff]  ;;  %v76_v5 = vld [vmem:[#allocation4 + $0x28] sm:$0xff]  ;;  %v69_v31 = vld [vmem:[#allocation2] sm:$0x1] }
  0x4c   :  { %v1205_v4 = vcombine.high %v71_v1, %v75_v2  ;;  %v1204_v6 = vcombine.low %v71_v1, %v75_v2  ;;  %v79_v7 = vld [vmem:[#allocation4 + $0x40] sm:$0xff]  ;;  %v1207_v9 = vcombine.high %v72_v3, %v76_v5  ;;  %v1206_v10 = vcombine.low %v72_v3, %v76_v5  ;;  %v80_v12 = vld [vmem:[#allocation4 + $0x48] sm:$0xff]  ;;  %v73_v32 = vld [vmem:[#allocation4 + $0x10] sm:$0xff] }
  0x4d   :  { %v83_v8 = vld [vmem:[#allocation4 + $0x60] sm:$0xff]  ;;  %v84_v13 = vld [vmem:[#allocation4 + $0x68] sm:$0xff]  ;;  %v77_v33 = vld [vmem:[#allocation4 + $0x30] sm:$0xff]  ;;  %v70_v43 = vpack.c.bf16 %v69_v31, %v69_v31 }
  0x4e   :  { %v1213_v11 = vcombine.high %v79_v7, %v83_v8  ;;  %v87_v14 = vld [vmem:[#allocation4 + $0x80] sm:$0xff]  ;;  %309 = vmatprep.subr.bf16.mxu0 %v1205_v4  ;;  %v1215_v15 = vcombine.high %v80_v12, %v84_v13  ;;  %v88_v17 = vld [vmem:[#allocation4 + $0x88] sm:$0xff]  ;;  %350 = vmatprep.subr.bf16.mxu1 %v1207_v9  ;;  %v1212_v19 = vcombine.low %v79_v7, %v83_v8  ;;  %v74_v34 = vld [vmem:[#allocation4 + $0x18] sm:$0xff] }
  0x4f   :  { %v91_v16 = vld [vmem:[#allocation4 + $0xa0] sm:$0xff]  ;;  %v92_v18 = vld [vmem:[#allocation4 + $0xa8] sm:$0xff]  ;;  %310 = vmatpush1.bf16.msra.mxu0 %v1204_v6  ;;  %351 = vmatpush1.bf16.msra.mxu1 %v1206_v10  ;;  %v1214_v20 = vcombine.low %v80_v12, %v84_v13  ;;  %v78_v35 = vld [vmem:[#allocation4 + $0x38] sm:$0xff]  ;;  %v1209_v39 = vcombine.high %v73_v32, %v77_v33  ;;  %v1208_v45 = vcombine.low %v73_v32, %v77_v33 }
  0x50   :  { %311 = vmatprep.subr.bf16.mxu0 %v1213_v11  ;;  %v1221_v21 = vcombine.high %v87_v14, %v91_v16  ;;  %352 = vmatprep.subr.bf16.mxu1 %v1215_v15  ;;  %v1223_v22 = vcombine.high %v88_v17, %v92_v18  ;;  %v95_v23 = vld [vmem:[#allocation4 + $0xc0] sm:$0xff]  ;;  %v96_v25 = vld [vmem:[#allocation4 + $0xc8] sm:$0xff]  ;;  %v1220_v27 = vcombine.low %v87_v14, %v91_v16  ;;  %v81_v37 = vld [vmem:[#allocation4 + $0x50] sm:$0xff] }
  0x51   :  { %v99_v24 = vld [vmem:[#allocation4 + $0xe0] sm:$0xff]  ;;  %v100_v26 = vld [vmem:[#allocation4 + $0xe8] sm:$0xff]  ;;  %v1222_v28 = vcombine.low %v88_v17, %v92_v18  ;;  %v85_v40 = vld [vmem:[#allocation4 + $0x70] sm:$0xff]  ;;  %v1211_v41 = vcombine.high %v74_v34, %v78_v35  ;;  %v1210_v47 = vcombine.low %v74_v34, %v78_v35 }
  0x52   :  { %v1229_v29 = vcombine.high %v95_v23, %v99_v24  ;;  %v1231_v30 = vcombine.high %v96_v25, %v100_v26  ;;  %v1228_v36 = vcombine.low %v95_v23, %v99_v24  ;;  %v1230_v38 = vcombine.low %v96_v25, %v100_v26  ;;  %v82_v42 = vld [vmem:[#allocation4 + $0x58] sm:$0xff]  ;;  %v89_v46 = vld [vmem:[#allocation4 + $0x90] sm:$0xff]  ;;  %v1403_v3 = vld [vmem:[#allocation6 + $0x40] sm:$0xff]  }
  0x53   :  { %312 = vmatpush1.bf16.msra.mxu0 %v1212_v19  ;;  %353 = vmatpush1.bf16.msra.mxu1 %v1214_v20  ;;  %v86_v44 = vld [vmem:[#allocation4 + $0x78] sm:$0xff]  ;;  %v1217_v48 = vcombine.high %v81_v37, %v85_v40  ;;  %v93_v49 = vld [vmem:[#allocation4 + $0xb0] sm:$0xff]  ;;  %v1216_v53 = vcombine.low %v81_v37, %v85_v40  ;;  %v1404_v5 = vld [vmem:[#allocation6 + $0xc0] sm:$0xff]   ;;  %v265_v37 = vlaneseq }
  0x54   :  { %313 = vmatprep.subr.bf16.mxu0 %v1221_v21  ;;  %354 = vmatprep.subr.bf16.mxu1 %v1223_v22  ;;  %v1219_v50 = vcombine.high %v82_v42, %v86_v44  ;;  %v90_v51 = vld [vmem:[#allocation4 + $0x98] sm:$0xff]  ;;  %v97_v54 = vld [vmem:[#allocation4 + $0xd0] sm:$0xff]  ;;  %v1218_v55 = vcombine.low %v82_v42, %v86_v44  ;;  %v1225_v56 = vcombine.high %v89_v46, %v93_v49  ;;  %v1405_v6 = vld [vmem:[#allocation6] sm:$0xff]  }
  0x55   :  { %v94_v52 = vld [vmem:[#allocation4 + $0xb8] sm:$0xff]  ;;  %v101_v57 = vld [vmem:[#allocation4 + $0xf0] sm:$0xff]  ;;  %v1224_v61 = vcombine.low %v89_v46, %v93_v49  ;;  %v1406_v7 = vld [vmem:[#allocation6 + $0x80] sm:$0xff]   ;;  %vm1194_vm1 = vcmp.lt.s32.totalorder %v265_v37, 512 }
  0x56   :  { %v1227_v58 = vcombine.high %v90_v51, %v94_v52  ;;  %v98_v59 = vld [vmem:[#allocation4 + $0xd8] sm:$0xff]  ;;  %v1226_v62 = vcombine.low %v90_v51, %v94_v52  ;;  %v1233_v63 = vcombine.high %v97_v54, %v101_v57  ;;  %v1232_v2 = vcombine.low %v97_v54, %v101_v57  ;;  %v1408_v8 = vld [vmem:[#allocation6 + $0xc8] sm:$0xff]   ;;  %v1411_v11 = vld [vmem:[#allocation6 + $0x50] sm:$0xff]  }
  0x57   :  { %314 = vmatpush1.bf16.msra.mxu0 %v1220_v27  ;;  %355 = vmatpush1.bf16.msra.mxu1 %v1222_v28  ;;  %v102_v60 = vld [vmem:[#allocation4 + $0xf8] sm:$0xff]  ;;  %v1409_v9 = vld [vmem:[#allocation6 + $0x8] sm:$0xff]   ;;  %v1412_v12 = vld [vmem:[#allocation6 + $0xd0] sm:$0xff]  }
  0x58   :  { %315 = vmatprep.subr.bf16.mxu0 %v1229_v29  ;;  %356 = vmatprep.subr.bf16.mxu1 %v1231_v30  ;;  %v1235_v1 = vcombine.high %v98_v59, %v102_v60  ;;  %v1234_v4 = vcombine.low %v98_v59, %v102_v60  ;;  %v1410_v10 = vld [vmem:[#allocation6 + $0x88] sm:$0xff]   ;;  %v1413_v13 = vld [vmem:[#allocation6 + $0x10] sm:$0xff]   ;;  %v1415_v15 = vld [vmem:[#allocation6 + $0x58] sm:$0xff]  }
  0x59   :  { %v1414_v14 = vld [vmem:[#allocation6 + $0x90] sm:$0xff]   ;;  %v1416_v16 = vld [vmem:[#allocation6 + $0xd8] sm:$0xff]   ;;  %v1419_v19 = vld [vmem:[#allocation6 + $0x60] sm:$0xff]  }
  0x5a   :  { %v1417_v17 = vld [vmem:[#allocation6 + $0x18] sm:$0xff]   ;;  %v1420_v20 = vld [vmem:[#allocation6 + $0xe0] sm:$0xff]   ;;  %v1423_v23 = vld [vmem:[#allocation6 + $0x68] sm:$0xff]  }
  0x5b   :  { %316 = vmatpush1.bf16.msra.mxu0 %v1228_v36  ;;  %357 = vmatpush1.bf16.msra.mxu1 %v1230_v38  ;;  %v1418_v18 = vld [vmem:[#allocation6 + $0x98] sm:$0xff]   ;;  %v1421_v21 = vld [vmem:[#allocation6 + $0x20] sm:$0xff]   ;;  %v1424_v24 = vld [vmem:[#allocation6 + $0xe8] sm:$0xff]   ;;  %v1654_v38 = vshrl.u32 %v265_v37, 7 }
  0x5c   :  { %391 = vmatprep.subr.bf16.mxu0 %v1209_v39  ;;  %432 = vmatprep.subr.bf16.mxu1 %v1211_v41  ;;  %v1422_v22 = vld [vmem:[#allocation6 + $0xa0] sm:$0xff]   ;;  %v1425_v25 = vld [vmem:[#allocation6 + $0x28] sm:$0xff]   ;;  %v1427_v27 = vld [vmem:[#allocation6 + $0x70] sm:$0xff]  }
  0x5d   :  { %v1426_v26 = vld [vmem:[#allocation6 + $0xa8] sm:$0xff]   ;;  %v1428_v28 = vld [vmem:[#allocation6 + $0xf0] sm:$0xff]   ;;  %v1431_v31 = vld [vmem:[#allocation6 + $0x78] sm:$0xff]   ;;  %v267_v39 = vsub.s32 0, %v1654_v38  ;;  %v275_v41 = vsub.s32 2, %v1654_v38  ;;  %v271_v42 = vsub.s32 1, %v1654_v38 }
  0x5e   :  { %1236 = vmatmul.mubr.msk.bf16.vlgmr.msra.gmra.mrb[0].mxu0 %vm305_vm0, %v70_v43  ;;  %1237 = vmatmul.mubr.msk.bf16.vlgmr.msra.gmra.mrb[0].mxu1 %vm305_vm0, %v70_v43  ;;  %v1429_v29 = vld [vmem:[#allocation6 + $0x30] sm:$0xff]   ;;  %v1432_v32 = vld [vmem:[#allocation6 + $0xf8] sm:$0xff]   ;;  %v1435_v35 = vld [vmem:[#allocation6 + $0x140] sm:$0xff]  }
  0x5f   :  { %392 = vmatpush1.bf16.msra.mxu0 %v1208_v45  ;;  %433 = vmatpush1.bf16.msra.mxu1 %v1210_v47  ;;  %v1430_v30 = vld [vmem:[#allocation6 + $0xb0] sm:$0xff]   ;;  %v1433_v33 = vld [vmem:[#allocation6 + $0x38] sm:$0xff]   ;;  %v1436_v36 = vld [vmem:[#allocation6 + $0x1c0] sm:$0xff]  }
  0x60   :  { %393 = vmatprep.subr.bf16.mxu0 %v1217_v48  ;;  %434 = vmatprep.subr.bf16.mxu1 %v1219_v50  ;;  %v1434_v34 = vld [vmem:[#allocation6 + $0xb8] sm:$0xff]   ;;  %v1657_v40 = vld [vmem:[#allocation7] ss:$2 sm:$0xff] }
  0x61   :  { %423 = vmatprep.mubr.bf16.mxu0 %v1569_v0  ;;  %464 = vmatprep.mubr.bf16.mxu1 %v1569_v0  ;;  %v1407_v0 = vld [vmem:[#allocation6 + $0x48] sm:$0xff]   ;;  %v268_v44 = vrot.slane %v1657_v40, %v267_v39  ;;  %v276_v45 = vrot.slane %v1657_v40, %v275_v41  ;;  %v272_v46 = vrot.slane %v1657_v40, %v271_v42  ;;  %v291_v41 = vsub.s32 6, %v1654_v38  ;;  %v1454_v42 = vld [vmem:[#allocation6 + $0x1a0] sm:$0xff]  }
  0x63   :  { %394 = vmatpush1.bf16.msra.mxu0 %v1216_v53  ;;  %435 = vmatpush1.bf16.msra.mxu1 %v1218_v55 }
  0x64   :  { %395 = vmatprep.subr.bf16.mxu0 %v1225_v56  ;;  %436 = vmatprep.subr.bf16.mxu1 %v1227_v58 }
  0x67   :  { %396 = vmatpush1.bf16.msra.mxu0 %v1224_v61  ;;  %437 = vmatpush1.bf16.msra.mxu1 %v1226_v62 }
  0x68   :  { %397 = vmatprep.subr.bf16.mxu0 %v1233_v63  ;;  %438 = vmatprep.subr.bf16.mxu1 %v1235_v1 }
  0x6b   :  { %398 = vmatpush1.bf16.msra.mxu0 %v1232_v2  ;;  %439 = vmatpush1.bf16.msra.mxu1 %v1234_v4 }
  0x6c   :  { %1304 = vmatprep.subr.bf16.mxu0 %v1403_v3  ;;  %1326 = vmatprep.subr.bf16.mxu1 %v1404_v5  ;;  %v1437_v3 = vld [vmem:[#allocation6 + $0x100] sm:$0xff]  }
  0x6e   :  { %1238 = vmatmul.mubr.msk.bf16.vlgmr.msra.gmra.mrb[4].mxu0 %vm305_vm0, %v70_v43  ;;  %1239 = vmatmul.mubr.msk.bf16.vlgmr.msra.gmra.mrb[4].mxu1 %vm305_vm0, %v70_v43  ;;  %v279_v43 = vsub.s32 3, %v1654_v38 }
  0x6f   :  { %1305 = vmatpush3.bf16.msra.mxu0 %v1405_v6  ;;  %1327 = vmatpush3.bf16.msra.mxu1 %v1406_v7  ;;  %v1438_v6 = vld [vmem:[#allocation6 + $0x180] sm:$0xff]   ;;  %v1439_v7 = vld [vmem:[#allocation6 + $0x148] sm:$0xff]  }
  0x70   :  { %1306 = vmatprep.subr.bf16.mxu0 %v1407_v0  ;;  %1328 = vmatprep.subr.bf16.mxu1 %v1408_v8  ;;  %v280_v47 = vrot.slane %v1657_v40, %v279_v43  ;;  %v1440_v0 = vld [vmem:[#allocation6 + $0x1c8] sm:$0xff]   ;;  %v283_v43 = vsub.s32 4, %v1654_v38 }
  0x71   :  { %v1441_v8 = vld [vmem:[#allocation6 + $0x108] sm:$0xff]  }
  0x73   :  { %1307 = vmatpush3.bf16.msra.mxu0 %v1409_v9  ;;  %1329 = vmatpush3.bf16.msra.mxu1 %v1410_v10  ;;  %v287_v9 = vsub.s32 5, %v1654_v38  ;;  %v1442_v10 = vld [vmem:[#allocation6 + $0x188] sm:$0xff]  }
  0x74   :  { %1308 = vmatprep.subr.bf16.mxu0 %v1411_v11  ;;  %1330 = vmatprep.subr.bf16.mxu1 %v1412_v12  ;;  %v1443_v11 = vld [vmem:[#allocation6 + $0x150] sm:$0xff]   ;;  %v295_v12 = vsub.s32 7, %v1654_v38 }
  0x77   :  { %1309 = vmatpush3.bf16.msra.mxu0 %v1413_v13  ;;  %1331 = vmatpush3.bf16.msra.mxu1 %v1414_v14  ;;  %v1444_v13 = vld [vmem:[#allocation6 + $0x1d0] sm:$0xff]  }
  0x78   :  { %1310 = vmatprep.subr.bf16.mxu0 %v1415_v15  ;;  %1332 = vmatprep.subr.bf16.mxu1 %v1416_v16  ;;  %v1445_v14 = vld [vmem:[#allocation6 + $0x110] sm:$0xff]   ;;  %v288_v15 = vrot.slane %v1657_v40, %v287_v9 }
  0x79   :  { %v1446_v16 = vld [vmem:[#allocation6 + $0x190] sm:$0xff]  }
  0x7b   :  { %1311 = vmatpush3.bf16.msra.mxu0 %v1417_v17  ;;  %1333 = vmatpush3.bf16.msra.mxu1 %v1418_v18  ;;  %v1447_v17 = vld [vmem:[#allocation6 + $0x158] sm:$0xff]   ;;  %v296_v18 = vrot.slane %v1657_v40, %v295_v12 }
  0x7c   :  { %1312 = vmatprep.subr.bf16.mxu0 %v1419_v19  ;;  %1334 = vmatprep.subr.bf16.mxu1 %v1420_v20  ;;  %v1448_v19 = vld [vmem:[#allocation6 + $0x1d8] sm:$0xff]  }
  0x7f   :  { %1313 = vmatpush3.bf16.msra.mxu0 %v1421_v21  ;;  %1335 = vmatpush3.bf16.msra.mxu1 %v1422_v22 }
  0x80   :  { %1314 = vmatprep.subr.bf16.mxu0 %v1423_v23  ;;  %1336 = vmatprep.subr.bf16.mxu1 %v1424_v24  ;;  %v1449_v23 = vld [vmem:[#allocation6 + $0x118] sm:$0xff]  }
  0x83   :  { %1315 = vmatpush3.bf16.msra.mxu0 %v1425_v25  ;;  %1337 = vmatpush3.bf16.msra.mxu1 %v1426_v26 }
  0x84   :  { %1316 = vmatprep.subr.bf16.mxu0 %v1427_v27  ;;  %1338 = vmatprep.subr.bf16.mxu1 %v1428_v28  ;;  %v1450_v27 = vld [vmem:[#allocation6 + $0x198] sm:$0xff]   ;;  %v1451_v28 = vld [vmem:[#allocation6 + $0x160] sm:$0xff]  }
  0x87   :  { %1317 = vmatpush3.bf16.msra.mxu0 %v1429_v29  ;;  %1339 = vmatpush3.bf16.msra.mxu1 %v1430_v30 }
  0x88   :  { %1318 = vmatprep.subr.bf16.mxu0 %v1431_v31  ;;  %1340 = vmatprep.subr.bf16.mxu1 %v1432_v32  ;;  %v1452_v32 = vld [vmem:[#allocation6 + $0x1e0] sm:$0xff]  }
  0x8b   :  { %1319 = vmatpush3.bf16.msra.mxu0 %v1433_v33  ;;  %1341 = vmatpush3.bf16.msra.mxu1 %v1434_v34 }
  0x8c   :  { %1348 = vmatprep.subr.bf16.mxu0 %v1435_v35  ;;  %1370 = vmatprep.subr.bf16.mxu1 %v1436_v36  ;;  %v1453_v36 = vld [vmem:[#allocation6 + $0x120] sm:$0xff]  }
 0x131   :  { %v343_v48 = vpop.f32.mrb[0].mxu0  ;;  %v384_v50 = vpop.f32.mrb[0].mxu1 }
 0x132   :  { %v344_v49 = vadd.f32 %v343_v48, %v268_v44  ;;  %v345_v51 = vpop.f32.mrb[1].mxu0  ;;  %v385_v52 = vadd.f32 %v384_v50, %v276_v45  ;;  %v386_v54 = vpop.f32.mrb[1].mxu1  ;;  %v1455_v44 = vld [vmem:[#allocation6 + $0x168] sm:$0xff]   ;;  %v292_v48 = vrot.slane %v1657_v40, %v291_v41 }
 0x133   :  { %v346_v53 = vadd.f32 %v345_v51, %v272_v46  ;;  %v347_v55 = vpop.f32.mrb[2].mxu0  ;;  %v387_v57 = vadd.f32 %v386_v54, %v280_v47  ;;  %v388_v58 = vpop.f32.mrb[2].mxu1  ;;  %v1456_v46 = vld [vmem:[#allocation6 + $0x1e8] sm:$0xff]   ;;  %v1459_v51 = vld [vmem:[#allocation6 + $0x170] sm:$0xff]  }
 0x134   :  { %v473_v56 = vmax.f32 %v344_v49, 0.0  ;;  %v348_v59 = vpop.f32.mrb[3].mxu0  ;;  %v475_v60 = vmax.f32 %v385_v52, 0.0  ;;  %v389_v62 = vpop.f32.mrb[3].mxu1  ;;  %v1457_v47 = vld [vmem:[#allocation6 + $0x128] sm:$0xff]   ;;  %v284_v49 = vrot.slane %v1657_v40, %v283_v43  ;;  %v1460_v52 = vld [vmem:[#allocation6 + $0x1f0] sm:$0xff]  }
 0x135   :  { %v474_v61 = vmax.f32 %v346_v53, 0.0  ;;  %v476_v63 = vmax.f32 %v387_v57, 0.0  ;;  %v1458_v50 = vld [vmem:[#allocation6 + $0x1a8] sm:$0xff]   ;;  %v1461_v54 = vld [vmem:[#allocation6 + $0x130] sm:$0xff]   ;;  %v1463_v57 = vld [vmem:[#allocation6 + $0x178] sm:$0xff]  }
 0x136   :  { %v483_v1 = vpack.c.bf16 %v475_v60, %v475_v60  ;;  %v481_v4 = vpack.c.bf16 %v473_v56, %v473_v56  ;;  %v1462_v56 = vld [vmem:[#allocation6 + $0x1b0] sm:$0xff]   ;;  %v1464_v58 = vld [vmem:[#allocation6 + $0x1f8] sm:$0xff]  }
 0x137   :  { %v482_v2 = vpack.c.bf16 %v474_v61, %v474_v61  ;;  %v484_v5 = vpack.c.bf16 %v476_v63, %v476_v63  ;;  %v1465_v60 = vld [vmem:[#allocation6 + $0x138] sm:$0xff]  }
 0x138   :  { %v1466_v40 = vld [vmem:[#allocation6 + $0x1b8] sm:$0xff]  }
 0x139   :  { %778 = vmatprep.mubr.bf16.mxu0 %v482_v2  ;;  %818 = vmatprep.mubr.bf16.mxu1 %v484_v5 }
 0x13a   :  { %779 = vmatmul.mubr.bf16.vlgmr.msra.gmra.mrb[8].mxu0 %v481_v4  ;;  %819 = vmatmul.mubr.bf16.vlgmr.msra.gmra.mrb[8].mxu1 %v483_v1 }
 0x13b   :  { %1349 = vmatpush3.bf16.msra.mxu0 %v1437_v3  ;;  %1371 = vmatpush3.bf16.msra.mxu1 %v1438_v6  ;;  %v553_v3 = vld [vmem:[#allocation7 + $0x1] sm:$0x1] }
 0x13c   :  { %1350 = vmatprep.subr.bf16.mxu0 %v1439_v7  ;;  %1372 = vmatprep.subr.bf16.mxu1 %v1440_v0 }
 0x13f   :  { %1351 = vmatpush3.bf16.msra.mxu0 %v1441_v8  ;;  %1373 = vmatpush3.bf16.msra.mxu1 %v1442_v10 }
 0x140   :  { %1352 = vmatprep.subr.bf16.mxu0 %v1443_v11  ;;  %1374 = vmatprep.subr.bf16.mxu1 %v1444_v13  ;;  %v1570_v13 = vmov 1966171168  }
 0x141   :  { %v425_v20 = vpop.f32.mrb[4].mxu0  ;;  %v466_v22 = vpop.f32.mrb[4].mxu1 }
 0x142   :  { %v427_v21 = vpop.f32.mrb[5].mxu0  ;;  %v468_v26 = vpop.f32.mrb[5].mxu1  ;;  %v467_v53 = vadd.f32 %v466_v22, %v292_v48  ;;  %v426_v55 = vadd.f32 %v425_v20, %v284_v49 }
 0x143   :  { %1353 = vmatpush3.bf16.msra.mxu0 %v1445_v14  ;;  %v428_v24 = vadd.f32 %v427_v21, %v288_v15  ;;  %v429_v25 = vpop.f32.mrb[6].mxu0  ;;  %1375 = vmatpush3.bf16.msra.mxu1 %v1446_v16  ;;  %v469_v30 = vadd.f32 %v468_v26, %v296_v18  ;;  %v470_v31 = vpop.f32.mrb[6].mxu1  ;;  %v1170_v14 = vunpack.c.l.s4 %v1570_v13 }
 0x144   :  { %1354 = vmatprep.subr.bf16.mxu0 %v1447_v17  ;;  %v430_v29 = vpop.f32.mrb[7].mxu0  ;;  %1376 = vmatprep.subr.bf16.mxu1 %v1448_v19  ;;  %v471_v34 = vpop.f32.mrb[7].mxu1  ;;  %v479_v59 = vmax.f32 %v467_v53, 0.0  ;;  %v477_v61 = vmax.f32 %v426_v55, 0.0  ;;  %v891_v17 = vld [vmem:[#allocation7 + $0x3] sm:$0x1] }
 0x145   :  { %v478_v33 = vmax.f32 %v428_v24, 0.0  ;;  %v480_v35 = vmax.f32 %v469_v30, 0.0  ;;  %v1171_v19 = vunpack.c.0.s8 %v1170_v14 }
 0x146   :  { %v487_v62 = vpack.c.bf16 %v479_v59, %v479_v59  ;;  %v485_v63 = vpack.c.bf16 %v477_v61, %v477_v61 }
 0x147   :  { %1355 = vmatpush3.bf16.msra.mxu0 %v1449_v23  ;;  %v486_v39 = vpack.c.bf16 %v478_v33, %v478_v33  ;;  %1377 = vmatpush3.bf16.msra.mxu1 %v1450_v27  ;;  %v488_v45 = vpack.c.bf16 %v480_v35, %v480_v35  ;;  %v1174_v30 = vsub.s32 %v1171_v19, %v1654_v38 }
 0x148   :  { %1356 = vmatprep.subr.bf16.mxu0 %v1451_v28  ;;  %1378 = vmatprep.subr.bf16.mxu1 %v1452_v32  ;;  %v1571_v28 = vmov 0.0  }
 0x149   :  { %1116 = vmatprep.mubr.bf16.mxu0 %v486_v39  ;;  %1156 = vmatprep.mubr.bf16.mxu1 %v488_v45 }
 0x14b   :  { %1357 = vmatpush3.bf16.msra.mxu0 %v1453_v36  ;;  %1379 = vmatpush3.bf16.msra.mxu1 %v1454_v42 }
 0x14c   :  { %1358 = vmatprep.subr.bf16.mxu0 %v1455_v44  ;;  %1380 = vmatprep.subr.bf16.mxu1 %v1456_v46 }
 0x14f   :  { %1359 = vmatpush3.bf16.msra.mxu0 %v1457_v47  ;;  %1381 = vmatpush3.bf16.msra.mxu1 %v1458_v50 }
 0x150   :  { %1360 = vmatprep.subr.bf16.mxu0 %v1459_v51  ;;  %1382 = vmatprep.subr.bf16.mxu1 %v1460_v52 }
 0x153   :  { %1361 = vmatpush3.bf16.msra.mxu0 %v1461_v54  ;;  %1383 = vmatpush3.bf16.msra.mxu1 %v1462_v56 }
 0x154   :  { %1362 = vmatprep.subr.bf16.mxu0 %v1463_v57  ;;  %1384 = vmatprep.subr.bf16.mxu1 %v1464_v58 }
 0x157   :  { %1363 = vmatpush3.bf16.msra.mxu0 %v1465_v60  ;;  %1385 = vmatpush3.bf16.msra.mxu1 %v1466_v40 }
 0x15a   :  { %1117 = vmatmul.mubr.bf16.vlgmr.msra.gmra.mrb[12].mxu0 %v485_v63  ;;  %1157 = vmatmul.mubr.bf16.vlgmr.msra.gmra.mrb[12].mxu1 %v487_v62 }
 0x20d   :  { %v1320_v1 = vpop.f32.mrb[8].mxu0  ;;  %v1342_v2 = vpop.f32.mrb[8].mxu1 }
 0x20e   :  { %v1321_v4 = vpop.f32.mrb[9].mxu0  ;;  %v1343_v6 = vpop.f32.mrb[9].mxu1 }
 0x20f   :  { %v1322_v5 = vadd.f32 %v1321_v4, %v1320_v1  ;;  %v1323_v7 = vpop.f32.mrb[10].mxu0  ;;  %v1344_v0 = vadd.f32 %v1343_v6, %v1342_v2  ;;  %v1345_v8 = vpop.f32.mrb[10].mxu1 }
 0x210   :  { %v1324_v9 = vpop.f32.mrb[11].mxu0  ;;  %v1346_v11 = vpop.f32.mrb[11].mxu1 }
 0x211   :  { %v781_v10 = vadd.f32 %v1322_v5, %v553_v3 }
 0x213   :  { %v821_v12 = vadd.f32 %v1344_v0, %v781_v10 }
 0x215   :  { %v1167_v29 = vcombine.low %v821_v12, %v1571_v28 }
 0x217   :  { %v1175_v33 = vrot.slane %v1167_v29, %v1174_v30 }
 0x22d   :  { %v1364_v15 = vpop.f32.mrb[12].mxu0  ;;  %v1386_v16 = vpop.f32.mrb[12].mxu1 }
 0x22e   :  { %v1365_v18 = vpop.f32.mrb[13].mxu0  ;;  %v1387_v21 = vpop.f32.mrb[13].mxu1 }
 0x22f   :  { %v1366_v20 = vadd.f32 %v1365_v18, %v1364_v15  ;;  %v1367_v22 = vpop.f32.mrb[14].mxu0  ;;  %v1388_v23 = vadd.f32 %v1387_v21, %v1386_v16  ;;  %v1389_v24 = vpop.f32.mrb[14].mxu1 }
 0x230   :  { %v1368_v25 = vpop.f32.mrb[15].mxu0  ;;  %v1390_v27 = vpop.f32.mrb[15].mxu1 }
 0x231   :  { %v1119_v26 = vadd.f32 %v1366_v20, %v891_v17 }
 0x233   :  { %v1159_v31 = vadd.f32 %v1388_v23, %v1119_v26 }
 0x235   :  { %v1168_v32 = vcombine.low %v1159_v31, %v1571_v28 }
 0x237   :  { %v1182_v34 = vrot.slane %v1168_v32, %v1174_v30 }
 0x239   :  { %v1183_v35 = vcombine.low %v1175_v33, %v1182_v34 }
 0x23b   :  { %v1190_v36 = vrot.slane %v1183_v35, %v1174_v30 }
 0x23d   :  { %1196 = vst.msk [vmem:[%s1683_s4] sm:$0xf] %vm1194_vm1, %v1190_v36 }
 0x23e   :  { %1201 = vsyncpa [#allocation3], 1 }
 0x23f   :  { %1202 = vsyncpa [#allocation5], 1 }
 0x240   :  { %1203 = vsyncpa [#allocation8], 1 }

</bundles_post_ra>
